<compile_context>
chip_gen: v6e
topology: v6e:2x2x1
jax: 0.10.0
libtpu: 0.0.40
codegen_flags: <defaults>
</compile_context>

<pallas_src>
import jax
import jax.numpy as jnp
from jax import lax
from jax.experimental import pallas as pl
from jax.experimental.pallas import tpu as pltpu

_INF = jnp.float32(1e30)
_VMEM_LIMIT = 32 * 1024 * 1024  # safe on v5e/v6e/v7x; blocks below are <= a few MiB


def _pick_tile(dim, prefs):
    """Largest preferred tile that evenly divides `dim`, else the full dim.

    All `prefs` are multiples of the (8, 128) alignment for the axis they are
    used on; a full-dim block is always legal."""
    for t in prefs:
        if dim % t == 0:
            return t
    return dim


# ----------------------------- Pallas kernels ------------------------------ #

def _cost_kernel(x_ref, pet_ref, srcm2_ref, srcsq_ref, pesq_ref, cost_ref):
    """cost[i, j] = ||src[i] - (x[b,j] + PE[j])||^2 for one (b, S-tile, S_src-tile).

    srcm2 = -2*src, srcsq = |src|^2 (column), pesq = |x+PE|^2 (lane-oriented row)
    are precomputed outside, so the kernel is one MXU dot + broadcast adds —
    no cross-lane relayout on the critical path."""
    pe = x_ref[0] + pet_ref[...]                                  # (tS, D)
    cross = lax.dot_general(srcm2_ref[...], pe, (((1,), (1,)), ((), ())),
                            preferred_element_type=jnp.float32)   # (tsrc, tS)
    cost = cross + srcsq_ref[...] + pesq_ref[0]                   # (tsrc,1)+(1,tS) bcasts
    # a^2+b^2-2ab in f32 can go slightly negative for near-identical rows.
    cost_ref[0] = jnp.maximum(cost, 0.0)


def _warp_kernel(idx_ref, src_ref, out_ref):
    """new_pe[b, j, :] = src[idx[b, j], :] as a one-hot matmul built in-kernel.

    Grid axis 2 tiles S_src (reduction): each step adds the contribution of its
    S_src tile into the VMEM-resident output block.  One-hot kept in f32 so the
    copied rows are exact."""
    i = pl.program_id(2)
    tsrc = src_ref.shape[0]

    @pl.when(i == 0)
    def _():
        out_ref[...] = jnp.zeros_like(out_ref)

    idx = idx_ref[0]                                              # (tS, 1) int32
    cols = lax.broadcasted_iota(jnp.int32, (idx.shape[0], tsrc), 1) + i * tsrc
    onehot = (cols == idx).astype(jnp.float32)                    # (tS, tsrc)
    out_ref[0] += jnp.dot(onehot, src_ref[...],
                          preferred_element_type=jnp.float32)


def pairwise_cost(x, pe_table, src):
    """(B, S_src, S) squared distances between src rows and (x + pe_table) rows."""
    B, S, D = x.shape
    S_src = src.shape[0]
    tS = _pick_tile(S, (512, 256, 128))            # lane axis of the cost output
    tsrc = _pick_tile(S_src, (256, 128, 64, 32, 16, 8))

    # Tiny O(B*S*D) prep, fused by XLA; keeps the kernel pure-MXU + cheap adds.
    src_f32 = src.astype(jnp.float32)
    src_m2 = -2.0 * src_f32                                       # (S_src, D)
    src_sq = jnp.sum(jnp.square(src_f32), axis=-1, keepdims=True)  # (S_src, 1)
    pe = x.astype(jnp.float32) + pe_table.astype(jnp.float32)[None]
    pe_sq = jnp.sum(jnp.square(pe), axis=-1)[:, None, :]           # (B, 1, S) lane-oriented

    grid = (B, S // tS, S_src // tsrc)
    return pl.pallas_call(
        _cost_kernel,
        out_shape=jax.ShapeDtypeStruct((B, S_src, S), jnp.float32),
        grid_spec=pltpu.PrefetchScalarGridSpec(
            num_scalar_prefetch=0,
            grid=grid,
            in_specs=[
                pl.BlockSpec((1, tS, D), lambda b, j, i: (b, j, 0)),   # x
                pl.BlockSpec((tS, D), lambda b, j, i: (j, 0)),         # PE table
                pl.BlockSpec((tsrc, D), lambda b, j, i: (i, 0)),       # -2*src
                pl.BlockSpec((tsrc, 1), lambda b, j, i: (i, 0)),       # |src|^2
                pl.BlockSpec((1, 1, tS), lambda b, j, i: (b, 0, j)),   # |pe|^2
            ],
            out_specs=pl.BlockSpec((1, tsrc, tS), lambda b, j, i: (b, i, j)),
        ),
        compiler_params=pltpu.CompilerParams(
            dimension_semantics=("parallel", "parallel", "parallel"),
            vmem_limit_bytes=_VMEM_LIMIT),
    )(x.astype(jnp.float32), pe_table.astype(jnp.float32), src_m2, src_sq, pe_sq)


def warp_source(idx, src):
    """new_pe[b, j] = src[idx[b, j]] without materializing a one-hot in HBM."""
    B, S = idx.shape
    S_src, D = src.shape
    tS = _pick_tile(S, (512, 256, 128))
    tsrc = _pick_tile(S_src, (256, 128, 64, 32, 16, 8))
    idx3 = idx.astype(jnp.int32)[:, :, None]                      # (B, S, 1)

    grid = (B, S // tS, S_src // tsrc)                            # last axis = reduction
    return pl.pallas_call(
        _warp_kernel,
        out_shape=jax.ShapeDtypeStruct((B, S, D), jnp.float32),
        grid_spec=pltpu.PrefetchScalarGridSpec(
            num_scalar_prefetch=0,
            grid=grid,
            in_specs=[
                pl.BlockSpec((1, tS, 1), lambda b, j, i: (b, j, 0)),   # path indices
                pl.BlockSpec((tsrc, D), lambda b, j, i: (i, 0)),       # src tile
            ],
            out_specs=pl.BlockSpec((1, tS, D), lambda b, j, i: (b, j, 0)),
        ),
        compiler_params=pltpu.CompilerParams(
            dimension_semantics=("parallel", "parallel", "arbitrary"),
            vmem_limit_bytes=_VMEM_LIMIT),
    )(idx3, src.astype(jnp.float32))


# ------------- DTW DP (anti-diagonal wavefront) + backtracking -------------- #
# psi=None, window=None, max_step=None in the module -> unconstrained DTW.
# Note: reference runs the DP in float64; we use float32.

def _dtw_directions(cost):
    """Wavefront DTW DP over anti-diagonals.  cost: (n, m) float32.

    Returns dirs (n+m-1, n) int8 with dirs[i+j, i] = argmin direction at cell
    (i, j): 0=diag(i-1,j-1), 1=up(i-1,j), 2=left(i,j-1); first-min tie order
    (matches np.argmin in dtaidistance's best_path)."""
    n, m = cost.shape
    ndiag = n + m - 1
    i_idx = jnp.arange(n)
    d_idx = jnp.arange(ndiag, dtype=jnp.int32)
    j_mat = d_idx[:, None] - i_idx[None, :]                       # (ndiag, n)
    valid = (j_mat >= 0) & (j_mat < m)
    cost_diag = jnp.where(valid, cost[i_idx[None, :], jnp.clip(j_mat, 0, m - 1)], _INF)

    inf_row = jnp.full((n,), _INF, jnp.float32)

    def shift_down(v):   # v[i-1], INF inserted at i=0
        return jnp.concatenate([jnp.full((1,), _INF, jnp.float32), v[:-1]])

    def step(carry, inp):
        prev1, prev2 = carry                                      # acc at d-1, d-2
        c_d, valid_d, d = inp
        diag = shift_down(prev2)
        up = shift_down(prev1)
        left = prev1
        # cell (0,0): its virtual diagonal predecessor is 0
        diag = jnp.where((d == 0) & (i_idx == 0), jnp.float32(0.0), diag)
        best = jnp.minimum(jnp.minimum(diag, up), left)
        acc_d = jnp.where(valid_d, c_d + best, _INF)               # re-mask: no INF growth
        dir_d = jnp.where(diag <= up, 0, 1)
        dir_d = jnp.where(jnp.minimum(diag, up) <= left, dir_d, 2).astype(jnp.int8)
        return (acc_d, prev1), dir_d

    (_, _), dirs = lax.scan(step, (inf_row, inf_row), (cost_diag, valid, d_idx))
    return dirs


def _path_column_index(dirs, n, m):
    """idx[j] = largest source row i on the optimal warping path at column j
    ('last write wins' of `new_pe[b][j] = source_mean_pe[i]`)."""
    idx0 = jnp.zeros((m,), jnp.int32).at[m - 1].set(n - 1)

    def step(_, carry):
        i, j, idx = carry
        done = (i == 0) & (j == 0)
        c = dirs[i + j, i]                                        # direction code
        ni = jnp.where(c != 2, i - 1, i)
        nj = jnp.where(c != 1, j - 1, j)
        ni = jnp.where(done, i, ni)
        nj = jnp.where(done, j, nj)
        idx = idx.at[nj].max(jnp.where(done, jnp.int32(-1), ni))
        return ni, nj, idx

    _, _, idx = lax.fori_loop(0, n + m - 2, step,
                              (jnp.int32(n - 1), jnp.int32(m - 1), idx0))
    return idx


# --------------------------------- glue ------------------------------------ #

def sinusoidal_table(S, D, dtype=jnp.float32):
    pos = jnp.arange(S, dtype=jnp.float32)[:, None]
    i = jnp.arange(D, dtype=jnp.float32)[None, :]
    angle = pos / jnp.power(10000.0, (2.0 * jnp.floor(i / 2.0)) / D)
    pe = jnp.where(i % 2 == 0, jnp.sin(angle), jnp.cos(angle))
    return pe.astype(dtype)


def dtw_positional_encoding(x, source_mean_pe, pe_table):
    """Forward pass of DTWPositionalEncoding (single source_mean_pe).

    new_pe[b, j] = source_mean_pe[i] for the final (i, j) path entry at column j
    of the optimal DTW alignment between source_mean_pe and (x[b] + pe_table)."""
    # TODO(synk): the `isinstance(source_mean_pe, list)` branch (per-candidate
    # DTW distance + argmin selection) is not implemented; single source only.
    # TODO(synk): the sequential backtrack stays in JAX (lax loops), not Pallas.
    B, S, _ = x.shape
    S_src = source_mean_pe.shape[0]
    cost = pairwise_cost(x, pe_table, source_mean_pe)             # (B, S_src, S)
    dirs = jax.vmap(_dtw_directions)(cost)                        # (B, S_src+S-1, S_src)
    idx = jax.vmap(lambda d: _path_column_index(d, S_src, S))(dirs)   # (B, S)
    return warp_source(idx, source_mean_pe)                       # (B, S, D)


if __name__ == "__main__":
    B, S, D = 2, 8, 32
    S_src = 8
    key = jax.random.PRNGKey(0)
    kx, ks = jax.random.split(key)
    x = jax.random.normal(kx, (B, S, D), dtype=jnp.float32)
    pe_table = sinusoidal_table(S, D)
    # Deterministic synthetic "source mean PE" (would normally come from set_source_pes).
    source_mean_pe = (sinusoidal_table(S_src, D)
                      + 0.01 * jax.random.normal(ks, (S_src, D), dtype=jnp.float32))

    out = jax.jit(dtw_positional_encoding)(x, source_mean_pe, pe_table)
    out = jax.block_until_ready(out)
    assert out.shape == (B, S, D) and out.dtype == jnp.float32
    print("KERNEL_OK")
</pallas_src>

<mosaic_0001>
module attributes {stable_mosaic.version = 11 : i64} {
  func.func @_cost_kernel(%arg0: i32, %arg1: i32, %arg2: i32, %arg3: memref<1x8x32xf32, #tpu.memory_space<vmem>>, %arg4: memref<8x32xf32, #tpu.memory_space<vmem>>, %arg5: memref<8x32xf32, #tpu.memory_space<vmem>>, %arg6: memref<8x1xf32, #tpu.memory_space<vmem>>, %arg7: memref<1x1x8xf32, #tpu.memory_space<vmem>>, %arg8: memref<1x8x8xf32, #tpu.memory_space<vmem>>) attributes {dimension_semantics = [#tpu.dimension_semantics<parallel>, #tpu.dimension_semantics<parallel>, #tpu.dimension_semantics<parallel>], iteration_bounds = array<i64: 2, 1, 1>, scalar_prefetch = 0 : i64, scratch_operands = 0 : i64, tpu.core_type = #tpu.core_type<tc>, window_params = [{transform_indices = @transform_0, window_bounds = array<i64: 1, 8, 32>}, {transform_indices = @transform_1, window_bounds = array<i64: 8, 32>}, {transform_indices = @transform_2, window_bounds = array<i64: 8, 32>}, {transform_indices = @transform_3, window_bounds = array<i64: 8, 1>}, {transform_indices = @transform_4, window_bounds = array<i64: 1, 1, 8>}, {transform_indices = @transform_5, window_bounds = array<i64: 1, 8, 8>}]} {
    %c0 = arith.constant 0 : index
    %c0_0 = arith.constant 0 : index
    %c0_1 = arith.constant 0 : index
    %0 = vector.load %arg3[%c0, %c0_0, %c0_1] : memref<1x8x32xf32, #tpu.memory_space<vmem>>, vector<1x8x32xf32>
    %1 = vector.shape_cast %0 : vector<1x8x32xf32> to vector<8x32xf32>
    %c0_2 = arith.constant 0 : index
    %c0_3 = arith.constant 0 : index
    %2 = vector.load %arg4[%c0_2, %c0_3] : memref<8x32xf32, #tpu.memory_space<vmem>>, vector<8x32xf32>
    %3 = arith.addf %1, %2 : vector<8x32xf32>
    %c0_4 = arith.constant 0 : index
    %c0_5 = arith.constant 0 : index
    %4 = vector.load %arg5[%c0_4, %c0_5] : memref<8x32xf32, #tpu.memory_space<vmem>>, vector<8x32xf32>
    %cst = arith.constant dense<0.000000e+00> : vector<8x8xf32>
    %5 = tpu.matmul %4, %3, %cst {dimension_numbers = #tpu.dot_dimension_numbers<[1], [1], [0], [0], [0, 0, 1, 0], [], []>} : vector<8x32xf32>, vector<8x32xf32>, vector<8x8xf32> -> vector<8x8xf32>
    %c0_6 = arith.constant 0 : index
    %c0_7 = arith.constant 0 : index
    %6 = vector.load %arg6[%c0_6, %c0_7] : memref<8x1xf32, #tpu.memory_space<vmem>>, vector<8x1xf32>
    %7 = vector.broadcast %6 : vector<8x1xf32> to vector<8x8xf32>
    %8 = arith.addf %5, %7 : vector<8x8xf32>
    %c0_8 = arith.constant 0 : index
    %c0_9 = arith.constant 0 : index
    %c0_10 = arith.constant 0 : index
    %9 = vector.load %arg7[%c0_8, %c0_9, %c0_10] : memref<1x1x8xf32, #tpu.memory_space<vmem>>, vector<1x1x8xf32>
    %10 = vector.shape_cast %9 : vector<1x1x8xf32> to vector<1x8xf32>
    %11 = vector.broadcast %10 : vector<1x8xf32> to vector<8x8xf32>
    %12 = arith.addf %8, %11 : vector<8x8xf32>
    %cst_11 = arith.constant 0.000000e+00 : f32
    %13 = vector.broadcast %cst_11 : f32 to vector<8x8xf32>
    %14 = arith.maximumf %12, %13 : vector<8x8xf32>
    %c0_12 = arith.constant 0 : index
    %c0_13 = arith.constant 0 : index
    %c0_14 = arith.constant 0 : index
    %15 = vector.load %arg8[%c0_12, %c0_13, %c0_14] : memref<1x8x8xf32, #tpu.memory_space<vmem>>, vector<1x8x8xf32>
    %16 = vector.shape_cast %15 : vector<1x8x8xf32> to vector<8x8xf32>
    %17 = vector.shape_cast %14 : vector<8x8xf32> to vector<1x8x8xf32>
    tpu.vector_store %arg8[%c0_12, %c0_13, %c0_14], %17 {strides = array<i32>} : memref<1x8x8xf32, #tpu.memory_space<vmem>>, vector<1x8x8xf32>,
    return
  }
  func.func @transform_0(%arg0: i32, %arg1: i32, %arg2: i32) -> (i32, i32, i32) {
    %c0_i32 = arith.constant 0 : i32
    %c0_i32_0 = arith.constant 0 : i32
    return %arg0, %arg1, %c0_i32 : i32, i32, i32
  }
  func.func @transform_1(%arg0: i32, %arg1: i32, %arg2: i32) -> (i32, i32) {
    %c0_i32 = arith.constant 0 : i32
    %c0_i32_0 = arith.constant 0 : i32
    return %arg1, %c0_i32 : i32, i32
  }
  func.func @transform_2(%arg0: i32, %arg1: i32, %arg2: i32) -> (i32, i32) {
    %c0_i32 = arith.constant 0 : i32
    %c0_i32_0 = arith.constant 0 : i32
    return %arg2, %c0_i32 : i32, i32
  }
  func.func @transform_3(%arg0: i32, %arg1: i32, %arg2: i32) -> (i32, i32) {
    %c0_i32 = arith.constant 0 : i32
    %c0_i32_0 = arith.constant 0 : i32
    return %arg2, %c0_i32 : i32, i32
  }
  func.func @transform_4(%arg0: i32, %arg1: i32, %arg2: i32) -> (i32, i32, i32) {
    %c0_i32 = arith.constant 0 : i32
    %c0_i32_0 = arith.constant 0 : i32
    return %arg0, %c0_i32, %arg1 : i32, i32, i32
  }
  func.func @transform_5(%arg0: i32, %arg1: i32, %arg2: i32) -> (i32, i32, i32) {
    %c0_i32 = arith.constant 0 : i32
    return %arg0, %arg2, %arg1 : i32, i32, i32
  }
}

module attributes {stable_mosaic.version = 11 : i64} {
  func.func @_warp_kernel(%arg0: i32, %arg1: i32, %arg2: i32, %arg3: memref<1x8x1xi32, #tpu.memory_space<vmem>>, %arg4: memref<8x32xf32, #tpu.memory_space<vmem>>, %arg5: memref<1x8x32xf32, #tpu.memory_space<vmem>>) attributes {dimension_semantics = [#tpu.dimension_semantics<parallel>, #tpu.dimension_semantics<parallel>, #tpu.dimension_semantics<arbitrary>], iteration_bounds = array<i64: 2, 1, 1>, scalar_prefetch = 0 : i64, scratch_operands = 0 : i64, tpu.core_type = #tpu.core_type<tc>, window_params = [{transform_indices = @transform_0, window_bounds = array<i64: 1, 8, 1>}, {transform_indices = @transform_1, window_bounds = array<i64: 8, 32>}, {transform_indices = @transform_2, window_bounds = array<i64: 1, 8, 32>}]} {
    %c0_i32 = arith.constant 0 : i32
    %0 = arith.cmpi eq, %arg2, %c0_i32 : i32
    %1 = arith.extui %0 : i1 to i32
    %c0_i32_0 = arith.constant 0 : i32
    %2 = arith.cmpi ne, %1, %c0_i32_0 : i32
    scf.if %2 {
      %cst_11 = arith.constant 0.000000e+00 : f32
      %21 = vector.broadcast %cst_11 : f32 to vector<1x8x32xf32>
      %c0_12 = arith.constant 0 : index
      %c0_13 = arith.constant 0 : index
      %c0_14 = arith.constant 0 : index
      %22 = vector.load %arg5[%c0_12, %c0_13, %c0_14] : memref<1x8x32xf32, #tpu.memory_space<vmem>>, vector<1x8x32xf32>
      tpu.vector_store %arg5[%c0_12, %c0_13, %c0_14], %21 {strides = array<i32>} : memref<1x8x32xf32, #tpu.memory_space<vmem>>, vector<1x8x32xf32>,
    } else {
    }
    %c0 = arith.constant 0 : index
    %c0_1 = arith.constant 0 : index
    %c0_2 = arith.constant 0 : index
    %3 = vector.load %arg3[%c0, %c0_1, %c0_2] : memref<1x8x1xi32, #tpu.memory_space<vmem>>, vector<1x8x1xi32>
    %4 = vector.shape_cast %3 : vector<1x8x1xi32> to vector<8x1xi32>
    %5 = tpu.iota {dimensions = array<i32: 1>} : vector<8x8xi32>
    %c8_i32 = arith.constant 8 : i32
    %6 = arith.muli %arg2, %c8_i32 : i32
    %7 = vector.broadcast %6 : i32 to vector<8x8xi32>
    %8 = arith.addi %5, %7 : vector<8x8xi32>
    %9 = vector.broadcast %4 : vector<8x1xi32> to vector<8x8xi32>
    %10 = arith.cmpi eq, %8, %9 : vector<8x8xi32>
    %11 = arith.extui %10 : vector<8x8xi1> to vector<8x8xi32>
    %12 = arith.sitofp %11 : vector<8x8xi32> to vector<8x8xf32>
    %c0_3 = arith.constant 0 : index
    %c0_4 = arith.constant 0 : index
    %c0_5 = arith.constant 0 : index
    %13 = vector.load %arg5[%c0_3, %c0_4, %c0_5] : memref<1x8x32xf32, #tpu.memory_space<vmem>>, vector<1x8x32xf32>
    %14 = vector.shape_cast %13 : vector<1x8x32xf32> to vector<8x32xf32>
    %c0_6 = arith.constant 0 : index
    %c0_7 = arith.constant 0 : index
    %15 = vector.load %arg4[%c0_6, %c0_7] : memref<8x32xf32, #tpu.memory_space<vmem>>, vector<8x32xf32>
    %cst = arith.constant dense<0.000000e+00> : vector<8x32xf32>
    %16 = tpu.matmul %12, %15, %cst {dimension_numbers = #tpu.dot_dimension_numbers<[1], [0], [0], [1], [0, 0, 1, 1], [], []>} : vector<8x8xf32>, vector<8x32xf32>, vector<8x32xf32> -> vector<8x32xf32>
    %17 = arith.addf %14, %16 : vector<8x32xf32>
    %c0_8 = arith.constant 0 : index
    %c0_9 = arith.constant 0 : index
    %c0_10 = arith.constant 0 : index
    %18 = vector.load %arg5[%c0_8, %c0_9, %c0_10] : memref<1x8x32xf32, #tpu.memory_space<vmem>>, vector<1x8x32xf32>
    %19 = vector.shape_cast %18 : vector<1x8x32xf32> to vector<8x32xf32>
    %20 = vector.shape_cast %17 : vector<8x32xf32> to vector<1x8x32xf32>
    tpu.vector_store %arg5[%c0_8, %c0_9, %c0_10], %20 {strides = array<i32>} : memref<1x8x32xf32, #tpu.memory_space<vmem>>, vector<1x8x32xf32>,
    return
  }
  func.func @transform_0(%arg0: i32, %arg1: i32, %arg2: i32) -> (i32, i32, i32) {
    %c0_i32 = arith.constant 0 : i32
    %c0_i32_0 = arith.constant 0 : i32
    return %arg0, %arg1, %c0_i32 : i32, i32, i32
  }
  func.func @transform_1(%arg0: i32, %arg1: i32, %arg2: i32) -> (i32, i32) {
    %c0_i32 = arith.constant 0 : i32
    %c0_i32_0 = arith.constant 0 : i32
    return %arg2, %c0_i32 : i32, i32
  }
  func.func @transform_2(%arg0: i32, %arg1: i32, %arg2: i32) -> (i32, i32, i32) {
    %c0_i32 = arith.constant 0 : i32
    %c0_i32_0 = arith.constant 0 : i32
    return %arg0, %arg1, %c0_i32 : i32, i32, i32
  }
}

</mosaic_0001>

<bundles_post_ra>
// kernel: custom-call.11
= control target key start
LH: loop header
LB: loop body
LE: loop exit
PB: predicated region body
PF: predicated region fallthrough
CT: control target
= control target key end

     0   :  { %s6_s0 = inlined_call_operand.vmem [shape: s8[15,2,8], index: 0, kind: output, shape index: {}]  }

// kernel: custom-call.6
= control target key start
LH: loop header
LB: loop body
LE: loop exit
PB: predicated region body
PF: predicated region fallthrough
CT: control target
= control target key end

     0   :  { %s6_s0 = inlined_call_operand.vmem [shape: f32[2,8], index: 0, kind: output, shape index: {}]  }

// kernel: custom-call.7
= control target key start
LH: loop header
LB: loop body
LE: loop exit
PB: predicated region body
PF: predicated region fallthrough
CT: control target
= control target key end

     0   :  { %s6_s0 = inlined_call_operand.vmem [shape: s32[2], index: 0, kind: output, shape index: {}]  }

// kernel: dtw_positional_encoding.2
= control target key start
LH: loop header
LB: loop body
LE: loop exit
PB: predicated region body
PF: predicated region fallthrough
CT: control target
= control target key end

     0   :  { %s692_s18 = smov 0   ;;  %s694_s19 = smov 0   ;;  %s737_s0 = inlined_call_operand.vmem [shape: f32[2,8,32], index: 0, kind: input, shape index: {}]   ;;  %s738_s1 = inlined_call_operand.vmem [shape: f32[8,32], index: 1, kind: input, shape index: {}]   ;;  %s739_s2 = inlined_call_operand.vmem [shape: f32[8,32], index: 2, kind: input, shape index: {}]   ;;  %s740_s3 = inlined_call_operand.vmem [shape: f32[8,1], index: 3, kind: input, shape index: {}]   ;;  %s741_s4 = inlined_call_operand.vmem [shape: f32[2,1,8], index: 4, kind: input, shape index: {}]   ;;  %s742_s5 = inlined_call_operand.vmem [shape: f32[2,8,8], index: 5, kind: output, shape index: {}]  }
   0x1   :  { %s696_s20 = smov 0  }
   0x2 LB: > { %s34_s21 = sadd.s32 1, %s653_s19  ;;  %p592_p0 = scmp.ge.s32.totalorder %s657_s20, 1  ;;  %s657_s20 = sphi %s696_s20, %s15_s20   ;;  %s653_s19 = sphi %s694_s19, %s744_s19   ;;  %s649_s18 = sphi %s692_s18, %s743_s18  }
   0x3   : > { %p36_p1 = scmp.ge.s32.totalorder %s34_s21, 2  ;;  %p254_p2 = scmp.lt.s32.totalorder %s657_s20, 3 }
   0x5   : > { %s746_s21 = smov (%p36_p1, %s34_s21), 0  ;;  %p255_p3 = pnand %p592_p0, %p254_p2 }
   0x6   : > { %p307_p4 = scmp.lt.s32.totalorder (!%p255_p3), %s649_s18, 1 }
   0x7   : > { %258 = sbr.rel (%p255_p3) target bundleno = 221 (0xdd), region = 40 }
   0xc   : > { %v659_v0 = vmov 0.0   ;;  %vm660_vm0 = vmmov 0   ;;  %v346_v1 = vld [vmem:[%s740_s3] sm:$0xff]  ;;  %s748_s18 = smov (!%p307_p4, %s649_s18), 1  ;;  %v661_v2 = vmov 0   ;;  %vm352_vm1 = vcmask 261120  }
   0xd   : > { %602 = vmatprep.subr.mxu0 %v659_v0  ;;  %604 = vmatprep.mubr.msk.f32.mxu0 %vm660_vm0, %v659_v0  ;;  %s593_s24 = sshll.u32 %s748_s18, 3  ;;  %v343_v3 = vld [vmem:[%s738_s1] sm:$0xff]  ;;  %s331_s9 = scalar_lea.vmem %s741_s4, %s748_s18  ;;  %vm438_vm2 = vcmask 64512  }
   0xe   : > { %634 = vset.pattern.permute.xlu0 %v661_v2  ;;  %s313_s29 = scalar_lea.vmem %s737_s0, %s593_s24  ;;  %v345_v6 = vld [vmem:[%s739_s2] sm:$0xff]  ;;  %s341_s12 = scalar_lea.vmem %s742_s5, %s593_s24 }
   0xf   : > { %349 = vperm.xlu0 %634, %v346_v1   ;;  %v342_v4 = vld [vmem:[%s313_s29] sm:$0xff] }
  0x10   : > { %v344_v5 = vadd.f32 %v343_v3, %v342_v4  ;;  %v597_v9 = vld [vmem:[%s331_s9] ss:$0 sm:$0xff] }
  0x12   : > { %603 = vmatpush3.xpose.msk.msra.mxu0 %vm352_vm1, %v344_v5 }
  0x15   : > { %605 = vmatmul.mubr.msk.f32.vlgmr.msra.gmra.mxu0 %vm352_vm1, %v345_v6 }
  0x8a   : > { %v350_v7 = vpop.permute.xlu0 %349 }
  0xd5   : > { %v425_v8 = vpop.f32.mrf.mxu0 }
  0xd6   : > { %v426_v10 = vadd.f32 %v425_v8, %v350_v7 }
  0xd7   : > { %v606_v11 = vpop.f32.mrf.mxu0 }
  0xd8   : > { %v436_v12 = vadd.f32 %v597_v9, %v426_v10 }
  0xda   : > { %v437_v13 = vmax.f32 %v436_v12, 0.0 }
  0xdc   : > { %439 = vst.msk [vmem:[%s341_s12] sm:$0xff] %vm438_vm2, %v437_v13 }
  0xdd PF: > { %s15_s20 = sadd.s32 1, %s657_s20   ;;  %s743_s18 = smov %s653_s19 }
  0xde   : > { %p12_p5 = scmp.ge.s32.totalorder %s15_s20, 4   ;;  %s744_s19 = smov %s746_s21 }
  0xe0   :  { %14 = sbr.rel (!%p12_p5) target bundleno = 2 (0x2), region = 82 }

// kernel: dtw_positional_encoding.3
= control target key start
LH: loop header
LB: loop body
LE: loop exit
PB: predicated region body
PF: predicated region fallthrough
CT: control target
= control target key end

     0   :  { %7 = vsyncpa [#allocation3], 0  ;;  %s676_s0 = inlined_call_operand.vmem [shape: s32[2,8,1], index: 0, kind: input, shape index: {}]   ;;  %s677_s1 = inlined_call_operand.vmem [shape: f32[8,32], index: 1, kind: input, shape index: {}]   ;;  %s678_s2 = inlined_call_operand.hbm [shape: f32[2,8,32], index: 2, kind: output, shape index: {}]  }
   0x1   :  { %9 = vsyncpa [#allocation3 + $0x1], 0  ;;  %s566_s9 = smov 0   ;;  %s568_s10 = smov 0  }
   0x2   :  { %s570_s11 = smov 0   ;;  %s572_s12 = smov 0  }
   0x3   :  { %s574_s13 = smov 0   ;;  %s576_s14 = smov 0  }
   0x4 LB: > { %s389_s15 = sadd.s32 4294967295, %s545_s14   ;;  %s390_s16 = sadd.s32 4294967294, %s545_s14   ;;  %s545_s14 = sphi %s576_s14, %s15_s14   ;;  %s541_s13 = sphi %s574_s13, %s685_s13   ;;  %s537_s12 = sphi %s572_s12, %s684_s12   ;;  %s533_s11 = sphi %s570_s11, %s683_s11   ;;  %s529_s10 = sphi %s568_s10, %s682_s10   ;;  %s525_s9 = sphi %s566_s9, %s681_s9  }
   0x5   : > { %s34_s17 = sadd.s32 1, %s541_s13  ;;  %s97_s18 = sadd.s32 1, %s533_s11 }
   0x6   : > { %p36_p0 = scmp.ge.s32.totalorder %s34_s17, 2  ;;  %p107_p1 = scmp.ne.s32.totalorder %s533_s11, %s529_s10 }
   0x7   : > { %p108_p2 = scmp.eq.s32.totalorder %s389_s15, 1  ;;  %p113_p3 = scmp.ne.s32.totalorder %s529_s10, %s525_s9 }
   0x8   : > { %s687_s17 = smov (%p36_p0, %s34_s17), 0  ;;  %p114_p5 = scmp.eq.s32.totalorder %s390_s16, 1 }
   0x9   : > { %p606_p4 = por %p108_p2, %p107_p1  ;;  %s92_s20 = ssub.s32 %s541_s13, %s687_s17 }
   0xa   : > { %p394_p6 = scmp.ge.s32.totalorder %s545_s14, 1  ;;  %p95_p7 = scmp.eq.s32.totalorder %s92_s20, 0 }
   0xb   : > { %p613_p8 = por %p114_p5, %p113_p3  ;;  %p149_p9 = scmp.lt.s32.totalorder %s545_s14, 3 }
   0xc   : > { %s619_s22 = scalar_select %p95_p7, %s533_s11, %s97_s18  }
   0xd   : > { %p150_p10 = pnand %p394_p6, %p149_p9 }
   0xe   : > { %p177_p11 = scmp.lt.s32.totalorder (!%p150_p10), %s537_s12, 1  ;;  %s174_s30 = sand.u32 (!%p150_p10), 1, %s529_s10  }
   0xf   : > { %153 = sbr.rel (%p150_p10) target bundleno = 359 (0x167), region = 28  ;;  %s395_s3 = sshll.u32 (!%p150_p10), %s174_s30, 3 }
  0x10   : > { %s176_s4 = scalar_lea.vmem (!%p150_p10), [#allocation2], %s395_s3  ;;  %s400_s5 = sshll.u32 (!%p150_p10), %s537_s12, 7 }
  0x11   : > { %s300_s6 = sshll.u32 (!%p150_p10), %s176_s4, 4  ;;  %s635_s15 = scalar_lea.hbm (!%p150_p10), %s678_s2, %s400_s5  ;;  %s301_s6 = int_to_ptr.vmem [resolvable:$true] %s300_s6 }
  0x12   : > { %s286_s16 = scalar_lea.sflag (!%p150_p10), [#allocation3], %s174_s30  ;;  %s469_s18 = scalar_lea.vmem (!%p150_p10), %s301_s6, 128 }
  0x13   : > { %p470_p12 = scmp.ne.s32.totalorder (!%p150_p10), %s301_s6, %s469_s18  ;;  %s550_s20 = smov (!%p150_p10), [#allocation2]  }
  0x14   : > { %v547_v0 = vmov 0   ;;  %v548_v1 = vmov 0.0   ;;  %s178_s23 = scalar_select %p177_p11, %s537_s12, 1  ;;  %v207_v2 = vld [vmem:[%s677_s1] sm:$0xff]  ;;  %vm549_vm0 = vmmov 0   ;;  %vm192_vm1 = vcmask 261120  }
  0x15   : > { %468 = vset.pattern.permute.xlu0 %v547_v0  ;;  %405 = vmatprep.subr.mxu0 %v548_v1  ;;  %193 = vst.msk [vmem:[%s176_s4] sm:$0xff] %vm192_vm1, %v548_v1  ;;  %v195_v4 = vlaneseq  ;;  %vm208_vm2 = vcmask 64512   ;;  %p471_p13 = pnand %p470_p12, %p606_p4  ;;  %s473_s12 = sshll.u32 %s550_s20, 4  ;;  %s474_s12 = int_to_ptr.vmem [resolvable:$false] %s473_s12 }
  0x16   : > { %s396_s26 = sshll.u32 %s178_s23, 3  ;;  %406 = vmatpush3.msra.mxu0 %v207_v2  ;;  %407 = vmatprep.mubr.msk.f32.mxu0 %vm549_vm0, %v548_v1  ;;  %s475_s23 = scalar_lea.vmem %s474_s12, 256 }
  0x17   : > { %s183_s29 = scalar_lea.vmem %s676_s0, %s396_s26  ;;  %v196_v5 = vand.u32 127, %v195_v4  ;;  %p472_p0 = pneg %p471_p13 }
  0x18   : > { %v194_v3 = vld [vmem:[%s183_s29] sm:$0xff]  ;;  %p476_p1 = scmp.lt.s32.totalorder %s301_s6, %s474_s12  ;;  %p477_p2 = scmp.lt.s32.totalorder %s475_s23, %s469_s18 }
  0x19   : > { %201 = vperm.xlu0 %468, %v194_v3  }
  0x1a   : > { %p478_p3 = por %p477_p2, %p476_p1 }
  0x1c   : > { %v206_v8 = vld [vmem:[%s176_s4] sm:$0xff]  ;;  %p479_p5 = pnand %p478_p3, %p472_p0 }
  0x94   : > { %v202_v6 = vpop.permute.xlu0 %201 }
  0x95   : > { %vm203_vm3 = vcmp.eq.s32.totalorder %v196_v5, %v202_v6 }
  0x96   : > { %v397_v7 = vsel %vm203_vm3, 1.0, %v548_v1 }
  0x97   : > { %408 = vmatmul.mubr.msk.f32.vlgmr.msra.gmra.mxu0 %vm208_vm2, %v397_v7 }
 0x157   : > { %v278_v9 = vpop.f32.mrf.mxu0 }
 0x158   : > { %v282_v10 = vadd.f32 %v278_v9, %v206_v8 }
 0x159   : > { %v409_v11 = vpop.f32.mrf.mxu0 }
 0x15a   : > { %284 = vst.msk [vmem:[%s176_s4] sm:$0xff] %vm192_vm1, %v282_v10 }
 0x15b   : > { %482 = shalt.err (!%p479_p5)
}
 0x15c   : > { %s483_s24 = scalar_lea.hbm %s635_s15, 128  ;;  %s487_s27 = scalar_lea.hbm %s678_s2, 256 }
 0x15d   : > { %p484_p6 = scmp.ne.s32.totalorder %s635_s15, %s483_s24  ;;  %p488_p10 = scmp.lt.s32.totalorder %s635_s15, %s678_s2 }
 0x15e   : > { %p489_p11 = scmp.lt.s32.totalorder %s487_s27, %s483_s24 }
 0x15f   : > { %p485_p7 = pnand %p484_p6, %p606_p4 }
 0x160   : > { %p490_p12 = por %p489_p11, %p488_p10 }
 0x161   : > { %p486_p9 = pneg %p485_p7 }
 0x163   : > { %p491_p13 = pnand %p490_p12, %p486_p9 }
 0x165   : > { %494 = shalt.err (!%p491_p13)
}
 0x166   : > { %410 = dma.vmem_to_hbm [thread:$0]  (%p606_p4), %s301_s6, 128, %s635_s15, %s286_s16  }
 0x167 PF: > { %p416_p0 = scmp.ge.s32.totalorder %s545_s14, 2  ;;  %s312_s30 = sand.u32 1, %s525_s9  }
 0x168   : > { %s313_s3 = scalar_lea.sflag [#allocation3], %s312_s30 }
 0x169   : > { %p413_p1 = pnand %p416_p0, %p613_p8 }
 0x16b   : > { %p414_p2 = pneg %p413_p1 }
 0x16d   : > { %520 = dma.done.wait (%p414_p2), %s313_s3, 128  }
 0x16e   : > { %522 = vsyncadd (%p414_p2), %s313_s3, 4294967168  ;;  %s15_s14 = sadd.s32 1, %s545_s14   ;;  %s681_s9 = smov %s529_s10 }
 0x16f   : > { %p12_p3 = scmp.ge.s32.totalorder %s15_s14, 4   ;;  %s682_s10 = smov %s533_s11 }
 0x170   : > { %s683_s11 = smov %s619_s22  ;;  %s684_s12 = smov %s541_s13 }
 0x171   : > { %s685_s13 = smov %s687_s17  ;;  %14 = sbr.rel (!%p12_p3) target bundleno = 4 (0x4), region = 70 }
 0x176   :  { %318 = vsyncpa [#allocation3], 1 }
 0x177   :  { %320 = vsyncpa [#allocation3 + $0x1], 1 }

</bundles_post_ra>
